<compile_context>
chip_gen: v5e
topology: v5e:2x2
jax: 0.10.0
libtpu: 0.0.40
codegen_flags: <defaults>
</compile_context>

<pallas_src>
import functools

import numpy as np
import jax
import jax.numpy as jnp
from jax.experimental import pallas as pl
from jax.experimental.pallas import tpu as pltpu

D_IN = 2     # layer1 in_features
H = 10       # hidden width (layer1/layer2 out_features)
D_OUT = 1    # layer3 out_features


def mlp_kernel(x_ref, w1_ref, b1_ref, w2_ref, b2_ref, w3_ref, b3_ref, o_ref,
               *, chunk):
    """One (2, tile_n) batch tile in feature-major layout.

    x_ref : (2, tile_n)    w1: (10, 2)    b1: (10, 1)
    o_ref : (1, tile_n)    w2: (10, 10)   b2: (10, 1)
                           w3: (10, 1)    b3: (1, 1)   (w3 passed as a column)

    The tile is processed in `chunk`-lane sub-chunks so live vregs stay small
    while the DMA tile stays large.  Layers 1/2 use the MXU (f32 accumulate);
    layer 3 is a VPU multiply + XLU sublane reduction.
    """
    w1 = w1_ref[...]                        # (10, 2)   compute dtype
    w2 = w2_ref[...]                        # (10, 10)  compute dtype
    w3 = w3_ref[...].astype(jnp.float32)    # (10, 1)   f32 column
    b1 = b1_ref[...]                        # (10, 1)   f32
    b2 = b2_ref[...]                        # (10, 1)   f32
    b3 = b3_ref[...]                        # (1, 1)    f32
    cdt = w1.dtype

    n_chunks = x_ref.shape[1] // chunk      # static

    @pl.loop(0, n_chunks)
    def _(c):
        off = pl.multiple_of(c * chunk, chunk)
        xc = x_ref[:, pl.ds(off, chunk)]                          # (2, chunk)

        # Layer 1 + ReLU  (MXU)
        h1 = jnp.dot(w1, xc, preferred_element_type=jnp.float32) + b1
        h1 = jnp.maximum(h1, 0.0).astype(cdt)                     # (10, chunk)

        # Layer 2 + ReLU  (MXU)
        h2 = jnp.dot(w2, h1, preferred_element_type=jnp.float32) + b2
        h2 = jnp.maximum(h2, 0.0)                                  # (10, chunk) f32

        # Layer 3: scale by w3 column + cross-sublane reduce -> (1, chunk)
        out = jnp.sum(w3 * h2, axis=0, keepdims=True) + b3

        o_ref[:, pl.ds(off, chunk)] = out.astype(o_ref.dtype)


def circle_model_forward(x, params, *, tile_n=16384, chunk=512,
                         use_bf16=False, feature_major=False,
                         out_feature_major=False):
    """Forward pass of circleModel.

    x: (N, 2) float32 (or (2, N) if feature_major=True), any N.
    Returns (N, 1) float32 logits (or (1, N) if out_feature_major=True).

    params follow PyTorch nn.Linear convention:
      w1 (10, 2), b1 (10,), w2 (10, 10), b2 (10,), w3 (1, 10), b3 (1,)
    """
    w1, b1, w2, b2, w3, b3 = params

    assert chunk % 128 == 0, "chunk must be a multiple of 128 lanes"
    assert tile_n % chunk == 0, "tile_n must be a multiple of chunk"

    xt = x if feature_major else x.T        # (2, N) feature-major
    assert xt.shape[0] == D_IN
    N = xt.shape[1]

    in_dt = jnp.bfloat16 if use_bf16 else jnp.float32   # bf16 for v6e/v7x MXU
    xt = xt.astype(in_dt)

    # Clamp the DMA tile for small batches so the in-kernel chunk loop does
    # not spin over out-of-bounds lanes; keep it large otherwise so per-step
    # pipeline overhead is amortized and (on v7x) the grid still has steps.
    tile_n = max(chunk, min(tile_n, pl.cdiv(N, chunk) * chunk))

    # Weights in compute dtype; biases and the w3 column in f32 (post-MXU adds).
    w1c = jnp.asarray(w1, in_dt)                                 # (10, 2)
    w2c = jnp.asarray(w2, in_dt)                                 # (10, 10)
    w3c = jnp.asarray(w3, jnp.float32).reshape(H, D_OUT)         # (10, 1)
    b1c = jnp.asarray(b1, jnp.float32).reshape(H, 1)
    b2c = jnp.asarray(b2, jnp.float32).reshape(H, 1)
    b3c = jnp.asarray(b3, jnp.float32).reshape(D_OUT, 1)

    grid = (pl.cdiv(N, tile_n),)   # ragged last tile: OOB writes are dropped
    full = lambda a: pl.BlockSpec(a.shape, lambda i: (0, 0))

    out = pl.pallas_call(
        functools.partial(mlp_kernel, chunk=chunk),
        out_shape=jax.ShapeDtypeStruct((D_OUT, N), jnp.float32),
        grid_spec=pltpu.PrefetchScalarGridSpec(
            num_scalar_prefetch=0,
            grid=grid,
            in_specs=[
                pl.BlockSpec((D_IN, tile_n), lambda i: (0, i)),   # x tile
                full(w1c), full(b1c),
                full(w2c), full(b2c),
                full(w3c), full(b3c),
            ],
            out_specs=pl.BlockSpec((D_OUT, tile_n), lambda i: (0, i)),
        ),
        compiler_params=pltpu.CompilerParams(
            dimension_semantics=("parallel",),
        ),
    )(xt, w1c, b1c, w2c, b2c, w3c, b3c)                          # (1, N) f32

    return out if out_feature_major else out.T                    # (N, 1)


def init_params(key):
    """Deterministic init matching the PyTorch module's parameter shapes."""
    ks = jax.random.split(key, 6)
    # nn.Linear weight shape: (out_features, in_features); bias: (out_features,)
    w1 = jax.random.normal(ks[0], (H, D_IN), jnp.float32) * 0.5
    b1 = jax.random.normal(ks[1], (H,), jnp.float32) * 0.1
    w2 = jax.random.normal(ks[2], (H, H), jnp.float32) * 0.3
    b2 = jax.random.normal(ks[3], (H,), jnp.float32) * 0.1
    w3 = jax.random.normal(ks[4], (D_OUT, H), jnp.float32) * 0.3
    b3 = jax.random.normal(ks[5], (D_OUT,), jnp.float32) * 0.1
    return (w1, b1, w2, b2, w3, b3)


def reference_forward_np(x, params):
    """Exact float32 host reference (no XLA matmul-precision ambiguity)."""
    w1, b1, w2, b2, w3, b3 = [np.asarray(p, np.float32) for p in params]
    xn = np.asarray(x, np.float32)
    h1 = np.maximum(xn @ w1.T + b1, 0.0)
    h2 = np.maximum(h1 @ w2.T + b2, 0.0)
    return h2 @ w3.T + b3


if __name__ == "__main__":
    key = jax.random.PRNGKey(0)
    k_x, k_p = jax.random.split(key)

    # N=300: not a multiple of 128 or of the tile -> exercises the masked
    # ragged last tile; tile_n=256 / chunk=128 -> 2 grid steps, 2 chunks each.
    N = 300
    x = jax.random.normal(k_x, (N, D_IN), jnp.float32)
    params = init_params(k_p)

    out = circle_model_forward(x, params, tile_n=256, chunk=128)
    out = jax.block_until_ready(out)

    ref = reference_forward_np(x, params)
    assert out.shape == (N, D_OUT)
    # Tolerance covers possible reduced-precision (bf16-pass) f32 MXU matmuls;
    # wiring/layout bugs would produce O(0.1 .. 1) errors, easily caught here.
    max_err = float(jnp.max(jnp.abs(out - ref)))
    assert np.allclose(np.asarray(out), ref, atol=2e-2, rtol=2e-2), (
        f"mismatch vs reference, max abs err = {max_err}")

    print("KERNEL_OK")
</pallas_src>

<mosaic_0001>
module attributes {stable_mosaic.version = 11 : i64} {
  func.func @mlp_kernel(%arg0: i32, %arg1: memref<2x256xf32, #tpu.memory_space<vmem>>, %arg2: memref<10x2xf32, #tpu.memory_space<vmem>>, %arg3: memref<10x1xf32, #tpu.memory_space<vmem>>, %arg4: memref<10x10xf32, #tpu.memory_space<vmem>>, %arg5: memref<10x1xf32, #tpu.memory_space<vmem>>, %arg6: memref<10x1xf32, #tpu.memory_space<vmem>>, %arg7: memref<1x1xf32, #tpu.memory_space<vmem>>, %arg8: memref<1x256xf32, #tpu.memory_space<vmem>>) attributes {dimension_semantics = [#tpu.dimension_semantics<parallel>], iteration_bounds = array<i64: 2>, scalar_prefetch = 0 : i64, scratch_operands = 0 : i64, tpu.core_type = #tpu.core_type<tc>, window_params = [{transform_indices = @transform_0, window_bounds = array<i64: 2, 256>}, {pipeline_mode = #tpu.pipeline_mode<synchronous>, transform_indices = @transform_1, window_bounds = array<i64: 10, 2>}, {pipeline_mode = #tpu.pipeline_mode<synchronous>, transform_indices = @transform_2, window_bounds = array<i64: 10, 1>}, {pipeline_mode = #tpu.pipeline_mode<synchronous>, transform_indices = @transform_3, window_bounds = array<i64: 10, 10>}, {pipeline_mode = #tpu.pipeline_mode<synchronous>, transform_indices = @transform_4, window_bounds = array<i64: 10, 1>}, {pipeline_mode = #tpu.pipeline_mode<synchronous>, transform_indices = @transform_5, window_bounds = array<i64: 10, 1>}, {pipeline_mode = #tpu.pipeline_mode<synchronous>, transform_indices = @transform_6, window_bounds = array<i64: 1, 1>}, {transform_indices = @transform_7, window_bounds = array<i64: 1, 256>}]} {
    %c0 = arith.constant 0 : index
    %c0_0 = arith.constant 0 : index
    %0 = vector.load %arg2[%c0, %c0_0] : memref<10x2xf32, #tpu.memory_space<vmem>>, vector<10x2xf32>
    %c0_1 = arith.constant 0 : index
    %c0_2 = arith.constant 0 : index
    %1 = vector.load %arg4[%c0_1, %c0_2] : memref<10x10xf32, #tpu.memory_space<vmem>>, vector<10x10xf32>
    %c0_3 = arith.constant 0 : index
    %c0_4 = arith.constant 0 : index
    %2 = vector.load %arg6[%c0_3, %c0_4] : memref<10x1xf32, #tpu.memory_space<vmem>>, vector<10x1xf32>
    %c0_5 = arith.constant 0 : index
    %c0_6 = arith.constant 0 : index
    %3 = vector.load %arg3[%c0_5, %c0_6] : memref<10x1xf32, #tpu.memory_space<vmem>>, vector<10x1xf32>
    %c0_7 = arith.constant 0 : index
    %c0_8 = arith.constant 0 : index
    %4 = vector.load %arg5[%c0_7, %c0_8] : memref<10x1xf32, #tpu.memory_space<vmem>>, vector<10x1xf32>
    %c0_9 = arith.constant 0 : index
    %c0_10 = arith.constant 0 : index
    %5 = vector.load %arg7[%c0_9, %c0_10] : memref<1x1xf32, #tpu.memory_space<vmem>>, vector<1x1xf32>
    %c0_i32 = arith.constant 0 : i32
    %c2_i32 = arith.constant 2 : i32
    %6 = arith.addi %c0_i32, %c2_i32 : i32
    %c1_i32 = arith.constant 1 : i32
    scf.for %arg9 = %c0_i32 to %6 step %c1_i32  : i32 {
      %c1_i32_12 = arith.constant 1 : i32
      %7 = arith.muli %arg9, %c1_i32_12 : i32
      %c0_i32_13 = arith.constant 0 : i32
      %8 = arith.addi %c0_i32_13, %7 : i32
      %c128_i32 = arith.constant 128 : i32
      %9 = arith.muli %8, %c128_i32 : i32
      %10 = tpu.assume_multiple %9, 128 : i32
      %c0_14 = arith.constant 0 : index
      %11 = arith.index_cast %10 : i32 to index
      %12 = vector.load %arg1[%c0_14, %11] : memref<2x256xf32, #tpu.memory_space<vmem>>, vector<2x128xf32>
      %cst = arith.constant dense<0.000000e+00> : vector<10x128xf32>
      %13 = tpu.matmul %0, %12, %cst {dimension_numbers = #tpu.dot_dimension_numbers<[1], [0], [0], [1], [0, 0, 1, 1], [], []>} : vector<10x2xf32>, vector<2x128xf32>, vector<10x128xf32> -> vector<10x128xf32>
      %14 = vector.broadcast %3 : vector<10x1xf32> to vector<10x128xf32>
      %15 = arith.addf %13, %14 : vector<10x128xf32>
      %cst_15 = arith.constant 0.000000e+00 : f32
      %16 = vector.broadcast %cst_15 : f32 to vector<10x128xf32>
      %17 = arith.maximumf %15, %16 : vector<10x128xf32>
      %cst_16 = arith.constant dense<0.000000e+00> : vector<10x128xf32>
      %18 = tpu.matmul %1, %17, %cst_16 {dimension_numbers = #tpu.dot_dimension_numbers<[1], [0], [0], [1], [0, 0, 1, 1], [], []>} : vector<10x10xf32>, vector<10x128xf32>, vector<10x128xf32> -> vector<10x128xf32>
      %19 = vector.broadcast %4 : vector<10x1xf32> to vector<10x128xf32>
      %20 = arith.addf %18, %19 : vector<10x128xf32>
      %cst_17 = arith.constant 0.000000e+00 : f32
      %21 = vector.broadcast %cst_17 : f32 to vector<10x128xf32>
      %22 = arith.maximumf %20, %21 : vector<10x128xf32>
      %23 = vector.broadcast %2 : vector<10x1xf32> to vector<10x128xf32>
      %24 = arith.mulf %23, %22 : vector<10x128xf32>
      %cst_18 = arith.constant dense<0.000000e+00> : vector<128xf32>
      %25 = vector.multi_reduction <add>, %24, %cst_18 [0] : vector<10x128xf32> to vector<128xf32>
      %26 = vector.shape_cast %25 : vector<128xf32> to vector<1x128xf32>
      %27 = vector.broadcast %5 : vector<1x1xf32> to vector<1x128xf32>
      %28 = arith.addf %26, %27 : vector<1x128xf32>
      %c0_19 = arith.constant 0 : index
      %29 = arith.index_cast %10 : i32 to index
      %30 = vector.load %arg8[%c0_19, %29] : memref<1x256xf32, #tpu.memory_space<vmem>>, vector<1x128xf32>
      tpu.vector_store %arg8[%c0_19, %29], %28 {strides = array<i32>} : memref<1x256xf32, #tpu.memory_space<vmem>>, vector<1x128xf32>,
    }
    %c2_i32_11 = arith.constant 2 : i32
    return
  }
  func.func @transform_0(%arg0: i32) -> (i32, i32) {
    %c0_i32 = arith.constant 0 : i32
    %c0_i32_0 = arith.constant 0 : i32
    return %c0_i32, %arg0 : i32, i32
  }
  func.func @transform_1(%arg0: i32) -> (i32, i32) {
    %c0_i32 = arith.constant 0 : i32
    %c0_i32_0 = arith.constant 0 : i32
    %c0_i32_1 = arith.constant 0 : i32
    return %c0_i32, %c0_i32_0 : i32, i32
  }
  func.func @transform_2(%arg0: i32) -> (i32, i32) {
    %c0_i32 = arith.constant 0 : i32
    %c0_i32_0 = arith.constant 0 : i32
    %c0_i32_1 = arith.constant 0 : i32
    return %c0_i32, %c0_i32_0 : i32, i32
  }
  func.func @transform_3(%arg0: i32) -> (i32, i32) {
    %c0_i32 = arith.constant 0 : i32
    %c0_i32_0 = arith.constant 0 : i32
    %c0_i32_1 = arith.constant 0 : i32
    return %c0_i32, %c0_i32_0 : i32, i32
  }
  func.func @transform_4(%arg0: i32) -> (i32, i32) {
    %c0_i32 = arith.constant 0 : i32
    %c0_i32_0 = arith.constant 0 : i32
    %c0_i32_1 = arith.constant 0 : i32
    return %c0_i32, %c0_i32_0 : i32, i32
  }
  func.func @transform_5(%arg0: i32) -> (i32, i32) {
    %c0_i32 = arith.constant 0 : i32
    %c0_i32_0 = arith.constant 0 : i32
    %c0_i32_1 = arith.constant 0 : i32
    return %c0_i32, %c0_i32_0 : i32, i32
  }
  func.func @transform_6(%arg0: i32) -> (i32, i32) {
    %c0_i32 = arith.constant 0 : i32
    %c0_i32_0 = arith.constant 0 : i32
    %c0_i32_1 = arith.constant 0 : i32
    return %c0_i32, %c0_i32_0 : i32, i32
  }
  func.func @transform_7(%arg0: i32) -> (i32, i32) {
    %c0_i32 = arith.constant 0 : i32
    %c0_i32_0 = arith.constant 0 : i32
    return %c0_i32, %arg0 : i32, i32
  }
}

</mosaic_0001>

<bundles_post_ra>
// kernel: tpu_custom_call.1
= control target key start
LH: loop header
LB: loop body
LE: loop exit
PB: predicated region body
PF: predicated region fallthrough
CT: control target
= control target key end

     0   :  { %s948_s0 = inlined_call_operand.vmem [shape: f32[2,300], index: 0, kind: input, shape index: {}]   ;;  %s949_s1 = inlined_call_operand.vmem [shape: f32[10,2], index: 1, kind: input, shape index: {}]   ;;  %s950_s2 = inlined_call_operand.vmem [shape: f32[10,1], index: 2, kind: input, shape index: {}]   ;;  %s951_s3 = inlined_call_operand.vmem [shape: f32[10,10], index: 3, kind: input, shape index: {}]   ;;  %s952_s4 = inlined_call_operand.vmem [shape: f32[10,1], index: 4, kind: input, shape index: {}]   ;;  %s953_s5 = inlined_call_operand.vmem [shape: f32[10,1], index: 5, kind: input, shape index: {}]   ;;  %s954_s6 = inlined_call_operand.<no memory space> [shape: f32[1,1], index: 6, kind: input, shape index: {}]   ;;  %s955_s7 = inlined_call_operand.hbm [shape: f32[1,300], index: 7, kind: output, shape index: {}]  }
   0x1   :  { %v12_v0 = vstv %s954_s6 }
   0x2   :  { %13 = vst [vmem:[#allocation2] sm:$0x1] %v12_v0 }
   0x3   :  { %14 = vsyncpa [#allocation4], 0 }
   0x4   :  { %16 = vsyncpa [#allocation4 + $0x1], 0  ;;  %s741_s26 = smov 0   ;;  %s743_s27 = smov 0  }
   0x5   :  { %s745_s28 = smov 0   ;;  %s747_s29 = smov 0  }
   0x6 LB: > { %s539_s6 = sadd.s32 4294967295, %s690_s29   ;;  %s540_s30 = sadd.s32 4294967294, %s690_s29   ;;  %s690_s29 = sphi %s747_s29, %s961_s29   ;;  %s686_s28 = sphi %s745_s28, %s960_s28   ;;  %s682_s27 = sphi %s743_s27, %s959_s27   ;;  %s678_s26 = sphi %s741_s26, %s958_s26  }
   0x7   : > { %s764_s8 = sadd.s32 1, %s690_s29   ;;  %s181_s9 = sadd.s32 1, %s686_s28 }
   0x8   : > { %s178_s10 = ssub.s32 %s690_s29, %s764_s8  ;;  %p191_p0 = scmp.ne.s32.totalorder %s686_s28, %s682_s27 }
   0x9   : > { %p179_p1 = scmp.eq.s32.totalorder %s178_s10, 0  ;;  %p192_p2 = scmp.eq.s32.totalorder %s539_s6, 1 }
   0xa   : > { %p197_p3 = scmp.ne.s32.totalorder %s682_s27, %s678_s26  ;;  %p198_p4 = scmp.eq.s32.totalorder %s540_s30, 1 }
   0xb   : > { %s774_s11 = scalar_select %p179_p1, %s686_s28, %s181_s9  }
   0xc   : > { %p776_p5 = por %p192_p2, %p191_p0  ;;  %p780_p6 = por %p198_p4, %p197_p3 }
   0xd   : > { %p543_p7 = scmp.ge.s32.totalorder %s690_s29, 1  ;;  %p251_p8 = scmp.lt.s32.totalorder %s690_s29, 3 }
   0xf   : > { %p252_p9 = pnand %p543_p7, %p251_p8 }
  0x10   : > { %s284_s14 = sand.u32 (!%p252_p9), 1, %s682_s27   ;;  %s787_s15 = sshll.u32 (!%p252_p9), %s539_s6, 1 }
  0x11   : > { %255 = sbr.rel (%p252_p9) target bundleno = 363 (0x16b), region = 48  ;;  %s806_s22 = sshll.u32 (!%p252_p9), %s284_s14, 1 }
  0x12   : > { %p292_p10 = scmp.lt.s32.totalorder (!%p252_p9), %s787_s15, 2  ;;  %s286_s10 = scalar_lea.vmem (!%p252_p9), [#allocation3], %s806_s22 }
  0x13   : > { %s853_s16 = smov (!%p252_p9), 0  }
  0x16   : > { %v792_v1 = vld [vmem:[%s949_s1] sm:$0xff]  ;;  %v797_v2 = vld [vmem:[%s949_s1 + $0x8] sm:$0x3]  ;;  %s293_s21 = scalar_select %p292_p10, %s787_s15, 2 }
  0x17   : > { %v802_v3 = vld [vmem:[%s951_s3] sm:$0xff]  ;;  %v812_v4 = vld [vmem:[%s951_s3 + $0x8] sm:$0x3] }
  0x18   : > { %v817_v5 = vld [vmem:[%s953_s5] sm:$0xff]  ;;  %v827_v7 = vld [vmem:[%s953_s5 + $0x8] sm:$0x3]  ;;  %s546_s25 = sshll.u32 %s293_s21, 1 }
  0x19   : > { %v822_v6 = vld [vmem:[%s950_s2] sm:$0xff]  ;;  %v832_v8 = vld [vmem:[%s950_s2 + $0x8] sm:$0x3]  ;;  %s850_s9 = scalar_lea.vmem %s948_s0, %s546_s25 }
  0x1a   : > { %v837_v9 = vld [vmem:[%s952_s4] sm:$0xff]  ;;  %v843_v10 = vld [vmem:[%s952_s4 + $0x8] sm:$0x3] }
  0x1b   : > { %v845_v11 = vld [vmem:[#allocation2] sm:$0x1] }
  0x1c LB: >> { %v696_v12 = vmov 0   ;;  %s547_s17 = sshll.u32 %s694_s16, 7  ;;  %vm345_vm0 = vcmask 1041408   ;;  %vm338_vm1 = vcmask 15360   ;;  %vm384_vm2 = vcmask 80896   ;;  %s321_s16 = sadd.s32 1, %s694_s16   ;;  %s694_s16 = sphi %s853_s16, %s321_s16  }
  0x1d   : >> { %610 = vset.pattern.permute.xlu0 %v696_v12  ;;  %611 = vset.pattern.permute.xlu1 %v696_v12  ;;  %s861_s18 = sshra.s32 %s547_s17, 7  ;;  %v447_v41 = vlaneseq  ;;  %p318_p11 = scmp.ge.s32.totalorder %s321_s16, 2  }
  0x1e   : >> { %335 = vperm.xlu0 %610, %v832_v8   ;;  %381 = vperm.xlu1 %611, %v843_v10   ;;  %s548_s19 = sshll.u32 %s861_s18, 1  ;;  %s446_s21 = scalar_lea.vmem %s286_s10, %s861_s18 [#allocation3] }
  0x1f   : >> { %612 = vset.pattern.permute.xlu2 %v696_v12  ;;  %s326_s20 = scalar_lea.vmem %s850_s9, %s548_s19  ;;  %vm449_vm3 = vcmp.lt.s32.totalorder %v447_v41, 128  ;;  %s887_s23 = scalar_lea.sflag (%p318_p11), [#allocation4], %s284_s14 }
  0x20   : >> { %426 = vperm.xlu2 %612, %v827_v7   ;;  %v327_v13 = vld [vmem:[%s326_s20] sm:$0x3] }
  0x21   : >> { %549 = vmatpush.msk.msra.mxu0 %vm345_vm0, %v327_v13  ;;  %560 = vmatpush.msk.msra.mxu3 %vm345_vm0, %v327_v13 }
  0x22   : >> { %550 = vmatmul.msk.f32.vlgmr.msra.gmra.mxu0 %vm338_vm1, %v792_v1  ;;  %551 = vmatmul.msk.f32.vlgmr.msra.gmra.mxu3 %vm338_vm1, %v797_v2 }
  0x26   : >> { %330 = vperm.xlu0 %610, %v822_v6   ;;  %376 = vperm.xlu1 %611, %v837_v9  }
  0x28   : >> { %421 = vperm.xlu2 %612, %v817_v5  }
  0x2e   : >> { %441 = vperm.xlu0 %610, %v845_v11  }
  0x7a   : >> { %v427_v23 = vpop.permute.xlu2 %426 }
  0x82   : >> { %v422_v30 = vpop.permute.xlu2 %421 }
  0x90   : >> { %v336_v14 = vpop.permute.xlu0 %335  ;;  %v382_v22 = vpop.permute.xlu1 %381 }
  0x98   : >> { %v331_v16 = vpop.permute.xlu0 %330  ;;  %v377_v24 = vpop.permute.xlu1 %376 }
  0x9f   : >> { %v366_v15 = vpop.f32.mrf.mxu0 }
  0xa0   : >> { %v367_v18 = vadd.f32 %v366_v15, %v331_v16  ;;  %v442_v40 = vpop.permute.xlu0 %441 }
  0xa1   : >> { %v444_v43 = vperm.slane %v442_v40, 0 }
  0xa2   : >> { %v372_v21 = vmax.f32 %v367_v18, 0.0 }
  0xa5   : >> { %v369_v17 = vpop.f32.mrf.mxu3 }
  0xa6   : >> { %v370_v19 = vadd.f32 %v369_v17, %v336_v14 }
  0xa8   : >> { %v373_v20 = vmax.f32 %v370_v19, 0.0 }
  0xaa   : >> { %552 = vmatpush.msk.msra.mxu1 %vm345_vm0, %v373_v20  ;;  %561 = vmatpush.msk.msra.mxu2 %vm345_vm0, %v373_v20 }
  0xac   : >> { %409 = vmatpush.msra.mxu1 %v372_v21  ;;  %562 = vmatpush.msra.mxu2 %v372_v21 }
  0xad   : >> { %553 = vmatmul.msk.f32.vlgmr.msra.gmra.mxu1 %vm384_vm2, %v802_v3  ;;  %554 = vmatmul.msk.f32.vlgmr.msra.gmra.mxu2 %vm384_vm2, %v812_v4 }
 0x12a   : >> { %v411_v25 = vpop.f32.mrf.mxu1 }
 0x12b   : >> { %v412_v26 = vadd.f32 %v411_v25, %v377_v24 }
 0x12d   : >> { %v417_v29 = vmax.f32 %v412_v26, 0.0 }
 0x12f   : >> { %v429_v33 = vmul.f32 %v422_v30, %v417_v29 }
 0x130   : >> { %v414_v27 = vpop.f32.mrf.mxu2 }
 0x131   : >> { %v415_v28 = vadd.f32 %v414_v27, %v382_v22 }
 0x133   : >> { %v418_v31 = vmax.f32 %v415_v28, 0.0 }
 0x135   : >> { %v430_v32 = vmul.f32 %v427_v23, %v418_v31 }
 0x137   : >> { %v431_v34 = vsel %vm345_vm0, %v430_v32, 0.0 }
 0x138   : >> { %v432_v35 = vadd.f32 %v431_v34, %v429_v33 }
 0x13a   : >> { %v433_v36 = vrot.slane %v432_v35, 4 }
 0x13c   : >> { %v434_v37 = vadd.f32 %v433_v36, %v432_v35 }
 0x13e   : >> { %v435_v38 = vrot.slane %v434_v37, 2 }
 0x140   : >> { %v436_v39 = vadd.f32 %v435_v38, %v434_v37 }
 0x142   : >> { %v437_v42 = vrot.slane %v436_v39, 1 }
 0x144   : >> { %v438_v44 = vadd.f32 %v437_v42, %v436_v39  ;;  %320 = sbr.rel (!%p318_p11) target bundleno = 28 (0x1c), region = 92 }
 0x146   : >> { %v445_v45 = vadd.f32 %v444_v43, %v438_v44 }
 0x148   : >> { %451 = vst.msk [vmem:[%s446_s21] sm:$0x1] %vm449_vm3, %v445_v45 }
 0x149   : > { %459 = sbr.rel (!%p776_p5) target bundleno = 363 (0x16b), region = 59  ;;  %s461_s24 = ssub.s32 (%p776_p5), 3, %s787_s15 }
 0x14a   : > { %p462_p12 = scmp.lt.s32.totalorder (%p776_p5), %s461_s24, 2 }
 0x14e   : > { %s963_s24 = smov (!%p462_p12, %s461_s24), 2 }
 0x14f   : > { %s464_s25 = ssub.s32 2, %s963_s24 }
 0x150   : > { %s465_s6 = sshll.u32 %s464_s25, 4 }
 0x151   : > { %466 = vsyncadd %s887_s23, %s465_s6  ;;  %p557_p13 = scmp.ne.s32.totalorder %s963_s24, 0  ;;  %s468_s30 = scalar_lea.hbm %s955_s7, %s787_s15 }
 0x152   : > { %s469_s9 = sshll.u32 %s963_s24, 4  ;;  %s904_s16 = sshll.u32 %s286_s10, 4  ;;  %s471_s16 = int_to_ptr.vmem [resolvable:$true] %s904_s16 }
 0x153   : > { %s907_s17 = sshll.u32 %s468_s30, 4  ;;  %s613_s18 = sshra.s32 %s471_s16, 4  ;;  %s473_s17 = int_to_ptr.hbm [resolvable:$true] %s907_s17  ;;  %s614_s18 = int_to_ptr.vmem [resolvable:$true] %s613_s18 }
 0x154   : > { %s615_s19 = sshrl.u32 %s469_s9, 4  ;;  %s697_s15 = smov [#allocation3]  }
 0x155   : > { %s620_s20 = scalar_lea.vmem %s614_s18, %s615_s19  ;;  %s624_s22 = scalar_lea.vmem %s697_s15, 4 }
 0x156   : > { %p621_p0 = scmp.ne.s32.totalorder %s614_s18, %s620_s20  ;;  %p626_p3 = scmp.lt.s32.totalorder %s624_s22, %s620_s20 }
 0x158   : > { %p622_p1 = pnand %p621_p0, %p557_p13 }
 0x15a   : > { %p623_p2 = pneg %p622_p1 }
 0x15c   : > { %p628_p4 = pnand %p626_p3, %p623_p2 }
 0x15e   : > { %631 = shalt.err (!%p628_p4)
}
 0x15f   : > { %s632_s10 = sshra.s32 %s473_s17, 4  ;;  %s643_s14 = scalar_lea.hbm %s955_s7, 3  ;;  %s633_s10 = int_to_ptr.hbm [resolvable:$true] %s632_s10 }
 0x160   : > { %s639_s21 = scalar_lea.hbm %s633_s10, %s615_s19  ;;  %p644_p9 = scmp.lt.s32.totalorder %s633_s10, %s955_s7 }
 0x161   : > { %p640_p5 = scmp.ne.s32.totalorder %s633_s10, %s639_s21  ;;  %p645_p10 = scmp.lt.s32.totalorder %s643_s14, %s639_s21 }
 0x163   : > { %p641_p7 = pnand %p640_p5, %p557_p13  ;;  %p646_p11 = por %p645_p10, %p644_p9 }
 0x165   : > { %p642_p8 = pneg %p641_p7 }
 0x167   : > { %p647_p12 = pnand %p646_p11, %p642_p8 }
 0x169   : > { %650 = shalt.err (!%p647_p12)
}
 0x16a   : > { %475 = dma.vmem_to_hbm [thread:$0]  (%p557_p13), %s471_s16, %s469_s9, %s473_s17, %s887_s23  }
 0x16b PF: > { %p568_p0 = scmp.ge.s32.totalorder %s690_s29, 2  ;;  %s484_s18 = sand.u32 1, %s678_s26  }
 0x16c   : > { %s485_s19 = scalar_lea.sflag [#allocation4], %s484_s18 }
 0x16d   : > { %p565_p1 = pnand %p568_p0, %p780_p6 }
 0x16f   : > { %p566_p2 = pneg %p565_p1 }
 0x171   : > { %673 = dma.done.wait (%p566_p2), %s485_s19, 32  }
 0x172   : > { %675 = vsyncadd (%p566_p2), %s485_s19, 4294967264  ;;  %p19_p3 = scmp.ge.s32.totalorder %s764_s8, 4   ;;  %s958_s26 = smov %s682_s27 }
 0x173   : > { %s959_s27 = smov %s686_s28  ;;  %s960_s28 = smov %s774_s11 }
 0x174   : > { %s961_s29 = smov %s764_s8  ;;  %21 = sbr.rel (!%p19_p3) target bundleno = 6 (0x6), region = 103 }
 0x179   :  { %491 = vsyncpa [#allocation4], 1 }
 0x17a   :  { %493 = vsyncpa [#allocation4 + $0x1], 1 }

</bundles_post_ra>
